<compile_context>
chip_gen: v6e
topology: v6e:2x2x1
jax: 0.10.0
libtpu: 0.0.40
codegen_flags: <defaults>
</compile_context>

<pallas_src>
import functools

import jax
import jax.numpy as jnp
from jax.experimental import pallas as pl
from jax.experimental.pallas import tpu as pltpu


def _gem_kernel(p_ref, x_ref, o_ref, *, eps):
    """p_ref: SMEM (1,) learnable exponent; x_ref: (rb, HW); o_ref: (rb, 1)."""
    p = p_ref[0]
    # clamp(min=eps); accumulate in f32 regardless of input dtype.
    x = jnp.maximum(x_ref[...].astype(jnp.float32), eps)

    def finish(xp):
        m = jnp.mean(xp, axis=-1, keepdims=True)              # full-spatial avg pool
        o_ref[...] = jnp.power(m, 1.0 / p).astype(o_ref.dtype)

    # Fast path for the GeM default p == 3: two extra VPU multiplies per
    # element instead of two EUP transcendentals -> hot loop stays purely
    # HBM-roofline bound on all generations.
    @pl.when(p == 3.0)
    def _():
        finish(x * x * x)

    @pl.when(p != 3.0)
    def _():
        finish(jnp.power(x, p))


def _choose_row_block(rows, hw):
    """Pick the sublane (row) tile size.

    As large as a conservative VMEM budget allows (f32 working tile <= ~4 MiB:
    safe on v7x's 64 MiB VMEM with double-buffered input + f32 temporaries),
    so each grid step moves >= ~1 MiB of HBM and per-step overhead (~0.35 us)
    is amortized even for small H*W.  Kept small enough that there are >= 2
    grid steps when rows is large, so the "parallel" axis can shard across
    v7x's two TensorCores.
    """
    budget_f32_bytes = 4 * 1024 * 1024
    cap = max(8, budget_f32_bytes // (hw * 4))     # rows per block under budget
    rb = min(rows, 16384, cap)
    if rows >= 256:
        rb = min(rb, max(128, (rows // 2) // 128 * 128))   # keep >= 2 grid steps
    if rb >= rows:
        return rows                                        # single full block
    if rb >= 128:
        return (rb // 128) * 128                           # sublane/lane friendly
    return max(8, (rb // 8) * 8)                           # very wide rows fallback


def gem_pallas(x, p, eps=1e-6, row_block=None):
    """x: (N, C, H, W); p: learnable exponent of shape (1,). Returns (N, C, 1, 1)."""
    N, C, H, W = x.shape
    rows, hw = N * C, H * W
    x2 = x.reshape(rows, hw)            # free reshape; lanes = flattened spatial

    # TODO(synk): for extremely large H*W (tile > VMEM budget even at 8 rows)
    # split the spatial axis onto a second ("arbitrary") grid dim with an f32
    # accumulator; for tiny H*W (< 128) repack several rows per 128-lane chunk
    # to recover wasted lane bandwidth.  Not needed for typical GeM inputs,
    # which stay HBM-bound with this layout.
    if row_block is None:
        row_block = _choose_row_block(rows, hw)
    num_blocks = pl.cdiv(rows, row_block)   # no jnp.pad: stale rows in the
                                            # partial last block are pooled
                                            # independently and their writes
                                            # are dropped (out-of-bounds).

    in_tile_bytes = row_block * hw * x.dtype.itemsize
    f32_tile_bytes = row_block * hw * 4
    # Double-buffered input + f32 temporaries (+ slack); floored at 32 MiB,
    # capped at v7x's physical 64 MiB.
    vmem_limit_bytes = int(max(32 * 1024 * 1024,
                               min(64 * 1024 * 1024,
                                   2 * in_tile_bytes + 4 * f32_tile_bytes + (2 << 20))))

    p_arr = jnp.asarray(p, dtype=jnp.float32).reshape((1,))

    out2 = pl.pallas_call(
        functools.partial(_gem_kernel, eps=float(eps)),
        out_shape=jax.ShapeDtypeStruct((rows, 1), x.dtype),
        grid=(num_blocks,),
        in_specs=[
            pl.BlockSpec(memory_space=pltpu.SMEM),              # p (scalar param)
            pl.BlockSpec((row_block, hw), lambda i: (i, 0)),    # x row tile
        ],
        out_specs=pl.BlockSpec((row_block, 1), lambda i: (i, 0)),
        compiler_params=pltpu.CompilerParams(
            dimension_semantics=("parallel",),
            vmem_limit_bytes=vmem_limit_bytes,
        ),
    )(p_arr, x2)

    return out2.reshape(N, C, 1, 1)


if __name__ == "__main__":
    key = jax.random.PRNGKey(0)
    k0, k1 = jax.random.split(key)
    eps = 1e-6

    def ref_gem(x, p_scalar):
        xc = jnp.maximum(x, eps)
        m = jnp.mean(jnp.power(xc, p_scalar), axis=(2, 3), keepdims=True)
        return jnp.power(m, 1.0 / p_scalar)

    # Module-consistent small shape.
    N, C, H, W = 2, 4, 16, 16
    x = jax.random.normal(k0, (N, C, H, W), dtype=jnp.float32)

    # p = 3: matches nn.Parameter(torch.ones(1) * 3); exercises the VPU fast path.
    p3 = jnp.ones((1,), dtype=jnp.float32) * 3.0
    out3 = jax.block_until_ready(gem_pallas(x, p3, eps))
    assert out3.shape == (N, C, 1, 1)
    assert jnp.allclose(out3, ref_gem(x, 3.0), rtol=1e-4, atol=1e-5), "mismatch (p=3)"

    # Non-integer p: exercises the general exp(p*log(x)) path.
    p25 = jnp.ones((1,), dtype=jnp.float32) * 2.5
    out25 = jax.block_until_ready(gem_pallas(x, p25, eps))
    assert jnp.allclose(out25, ref_gem(x, 2.5), rtol=1e-4, atol=1e-5), "mismatch (p=2.5)"

    # Ragged row count with a forced small row_block: exercises the partial
    # last block (stale rows pooled independently, OOB writes dropped).
    x2 = jax.random.normal(k1, (3, 5, 16, 16), dtype=jnp.float32)
    outr = jax.block_until_ready(gem_pallas(x2, p3, eps, row_block=8))
    assert outr.shape == (3, 5, 1, 1)
    assert jnp.allclose(outr, ref_gem(x2, 3.0), rtol=1e-4, atol=1e-5), "mismatch (ragged)"

    print("KERNEL_OK")
</pallas_src>

<mosaic_0001>
module attributes {stable_mosaic.version = 11 : i64} {
  func.func @_gem_kernel(%arg0: i32, %arg1: memref<1xf32, #tpu.memory_space<smem>>, %arg2: memref<8x256xf32, #tpu.memory_space<vmem>>, %arg3: memref<8x1xf32, #tpu.memory_space<vmem>>) attributes {dimension_semantics = [#tpu.dimension_semantics<parallel>], iteration_bounds = array<i64: 1>, scalar_prefetch = 0 : i64, scratch_operands = 0 : i64, tpu.core_type = #tpu.core_type<tc>, window_params = [{transform_indices = @transform_0, window_bounds = array<i64: 1>}, {transform_indices = @transform_1, window_bounds = array<i64: 8, 256>}, {transform_indices = @transform_2, window_bounds = array<i64: 8, 1>}]} {
    %c0 = arith.constant 0 : index
    %0 = memref.load %arg1[%c0] : memref<1xf32, #tpu.memory_space<smem>>
    %c0_0 = arith.constant 0 : index
    %c0_1 = arith.constant 0 : index
    %1 = vector.load %arg2[%c0_0, %c0_1] : memref<8x256xf32, #tpu.memory_space<vmem>>, vector<8x256xf32>
    %cst = arith.constant 9.99999997E-7 : f32
    %2 = vector.broadcast %cst : f32 to vector<8x256xf32>
    %3 = arith.maximumf %1, %2 : vector<8x256xf32>
    %cst_2 = arith.constant 3.000000e+00 : f32
    %4 = arith.cmpf oeq, %0, %cst_2 : f32
    %5 = arith.extui %4 : i1 to i32
    %c0_i32 = arith.constant 0 : i32
    %6 = arith.cmpi ne, %5, %c0_i32 : i32
    scf.if %6 {
      %10 = arith.mulf %3, %3 : vector<8x256xf32>
      %11 = arith.mulf %10, %3 : vector<8x256xf32>
      %cst_5 = arith.constant dense<0.000000e+00> : vector<8xf32>
      %12 = vector.multi_reduction <add>, %11, %cst_5 [1] : vector<8x256xf32> to vector<8xf32>
      %13 = vector.shape_cast %12 : vector<8xf32> to vector<8x1xf32>
      %cst_6 = arith.constant 2.560000e+02 : f32
      %14 = vector.broadcast %cst_6 : f32 to vector<8x1xf32>
      %15 = arith.divf %13, %14 : vector<8x1xf32>
      %cst_7 = arith.constant 1.000000e+00 : f32
      %16 = arith.divf %cst_7, %0 : f32
      %17 = vector.broadcast %16 : f32 to vector<8x1xf32>
      %18 = math.powf %15, %17 : vector<8x1xf32>
      %c0_8 = arith.constant 0 : index
      %c0_9 = arith.constant 0 : index
      %19 = vector.load %arg3[%c0_8, %c0_9] : memref<8x1xf32, #tpu.memory_space<vmem>>, vector<8x1xf32>
      tpu.vector_store %arg3[%c0_8, %c0_9], %18 {strides = array<i32>} : memref<8x1xf32, #tpu.memory_space<vmem>>, vector<8x1xf32>,
    } else {
    }
    %cst_3 = arith.constant 3.000000e+00 : f32
    %7 = arith.cmpf one, %0, %cst_3 : f32
    %8 = arith.extui %7 : i1 to i32
    %c0_i32_4 = arith.constant 0 : i32
    %9 = arith.cmpi ne, %8, %c0_i32_4 : i32
    scf.if %9 {
      %10 = vector.broadcast %0 : f32 to vector<8x256xf32>
      %11 = math.powf %3, %10 : vector<8x256xf32>
      %cst_5 = arith.constant dense<0.000000e+00> : vector<8xf32>
      %12 = vector.multi_reduction <add>, %11, %cst_5 [1] : vector<8x256xf32> to vector<8xf32>
      %13 = vector.shape_cast %12 : vector<8xf32> to vector<8x1xf32>
      %cst_6 = arith.constant 2.560000e+02 : f32
      %14 = vector.broadcast %cst_6 : f32 to vector<8x1xf32>
      %15 = arith.divf %13, %14 : vector<8x1xf32>
      %cst_7 = arith.constant 1.000000e+00 : f32
      %16 = arith.divf %cst_7, %0 : f32
      %17 = vector.broadcast %16 : f32 to vector<8x1xf32>
      %18 = math.powf %15, %17 : vector<8x1xf32>
      %c0_8 = arith.constant 0 : index
      %c0_9 = arith.constant 0 : index
      %19 = vector.load %arg3[%c0_8, %c0_9] : memref<8x1xf32, #tpu.memory_space<vmem>>, vector<8x1xf32>
      tpu.vector_store %arg3[%c0_8, %c0_9], %18 {strides = array<i32>} : memref<8x1xf32, #tpu.memory_space<vmem>>, vector<8x1xf32>,
    } else {
    }
    return
  }
  func.func @transform_0(%arg0: i32) -> i32 {
    %c0_i32 = arith.constant 0 : i32
    %c0_i32_0 = arith.constant 0 : i32
    return %c0_i32 : i32
  }
  func.func @transform_1(%arg0: i32) -> (i32, i32) {
    %c0_i32 = arith.constant 0 : i32
    %c0_i32_0 = arith.constant 0 : i32
    return %arg0, %c0_i32 : i32, i32
  }
  func.func @transform_2(%arg0: i32) -> (i32, i32) {
    %c0_i32 = arith.constant 0 : i32
    %c0_i32_0 = arith.constant 0 : i32
    return %arg0, %c0_i32 : i32, i32
  }
}

</mosaic_0001>

<bundles_post_ra>
// kernel: tpu_custom_call.1
= control target key start
LH: loop header
LB: loop body
LE: loop exit
PB: predicated region body
PF: predicated region fallthrough
CT: control target
= control target key end

     0   :  { %8 = vsyncpa [#allocation4], 0  ;;  %s332_s9 = smov [#allocation3]   ;;  %s580_s0 = inlined_call_operand.<no memory space> [shape: f32[1], index: 0, kind: input, shape index: {}]   ;;  %s581_s1 = inlined_call_operand.hbm [shape: f32[8,256], index: 1, kind: input, shape index: {}]   ;;  %s582_s2 = inlined_call_operand.vmem [shape: f32[8,1], index: 2, kind: output, shape index: {}]  }
   0x1   :  { %s17_s10 = sshll.u32 %s332_s9, 4  ;;  %s18_s10 = int_to_ptr.vmem [resolvable:$true] %s17_s10 }
   0x2   :  { %s318_s11 = scalar_lea.vmem %s18_s10, 256  ;;  %p323_p1 = scmp.lt.s32.totalorder %s18_s10, %s18_s10 }
   0x3   :  { %p319_p0 = scmp.ne.s32.totalorder %s18_s10, %s318_s11  ;;  %p324_p2 = scmp.lt.s32.totalorder %s318_s11, %s318_s11 }
   0x5   :  { %p325_p3 = por %p324_p2, %p323_p1 }
   0x7   :  { %p326_p4 = pnand %p325_p3, %p319_p0 }
   0x9   :  { %329 = shalt.err (!%p326_p4)
}
   0xa   :  { %20 = dma.hbm_to_vmem [thread:$0]  %s581_s1, 256, %s18_s10, [#allocation4]  }
   0xb   :  { %330 = dma.done.wait [#allocation4], 256  }
   0xc   :  { %331 = vsyncadd [#allocation4], 4294967040  ;;  %p29_p5 = scmp.eq.f32.partialorder %s580_s0, 3.0  ;;  %v25_v0 = vld [vmem:[#allocation3] sm:$0xff]  ;;  %v26_v1 = vld [vmem:[#allocation3 + $0x8] sm:$0xff] }
   0xd   :  { %v358_v2 = vmax.f32 %v25_v0, 1e-06  ;;  %v360_v3 = vmax.f32 %v26_v1, 1e-06  ;;  %v42_v6 = vstv (%p29_p5), %s580_s0  ;;  %v333_v23 = vmov (%p29_p5), 2139095040  }
   0xe   :  { %32 = sbr.rel (!%p29_p5) target bundleno = 204 (0xcc), region = 17  ;;  %290 = vrcp.f32 (%p29_p5), %v42_v6  ;;  %v334_v28 = vmov (%p29_p5), 0  }
   0xf   :  { %v33_v4 = vmul.f32 (%p29_p5), %v358_v2, %v358_v2  ;;  %v34_v5 = vmul.f32 (%p29_p5), %v360_v3, %v360_v3 }
  0x11   :  { %v35_v7 = vmul.f32 (%p29_p5), %v33_v4, %v358_v2  ;;  %v36_v8 = vmul.f32 (%p29_p5), %v34_v5, %v360_v3 }
  0x13   :  { %v37_v9 = vadd.f32 %v36_v8, %v35_v7 }
  0x15   :  { %38 = vadd.xlane.f32.xlu0 %v37_v9 }
  0x1b   :  { %v291_v10 = vpop.eup %290 }
  0x1c   :  { %73 = vpush %v291_v10 }
  0x4d   :  { %s74_s17 = spop %73 }
  0x4e   :  { %v45_v14 = vstv %s74_s17 }
  0x4f   :  { %v79_v15 = vand.u32 2147483647, %v45_v14  ;;  %v84_v17 = vtrunc.f32 %v45_v14  ;;  %vm83_vm5 = vcmp.lt.f32.partialorder %v45_v14, 0 }
  0x50   :  { %v115_v24 = vsel %vm83_vm5, 0, %v333_v23  ;;  %v103_v29 = vsel %vm83_vm5, 2139095040, %v334_v28 }
  0x51   :  { %v88_v16 = vtrunc.f32 %v79_v15  ;;  %vm80_vm0 = vcmp.eq.f32.partialorder %v79_v15, 2139095040  ;;  %vm85_vm1 = vcmp.ne.f32.partialorder %v45_v14, %v84_v17  ;;  %vm87_vm7 = vcmp.lt.f32.partialorder %v79_v15, 1266679808 }
  0x52   :  { %vm372_vm2 = vmor %vm85_vm1, %vm80_vm0  ;;  %v116_v26 = vxor.u32 2147483648, %v115_v24 }
  0x53   :  { %v89_v18 = vcvt.f32.s32 %v88_v16  ;;  %vm92_vm4 = vmneg %vm372_vm2 }
  0x55   :  { %v90_v21 = vand.u32 1, %v89_v18 }
  0x57   :  { %vm91_vm3 = vcmp.eq.s32.totalorder %v90_v21, 1 }
  0x58   :  { %vm93_vm8 = vmand %vm91_vm3, %vm92_vm4  ;;  %vm121_vm3 = vcmp.ne.f32.partialorder %v45_v14, %v45_v14 }
  0x59   :  { %vm380_vm11 = vmand %vm87_vm7, %vm93_vm8  ;;  %vm81_vm8 = vcmp.eq.f32.partialorder %v45_v14, 0 }
  0x5a   :  { %v117_v33 = vsel %vm380_vm11, %v116_v26, %v115_v24 }
  0x9e   :  { %v39_v11 = vpop.xlane.xlu0 %38 }
  0x9f   :  { %v41_v12 = vmul.f32 0.00390625, %v39_v11 }
  0xa1   :  { %v75_v13 = vand.u32 2147483647, %v41_v12  ;;  %vm96_vm9 = vcmp.eq.f32.partialorder %v41_v12, 0  ;;  %vm95_vm12 = vcmp.lt.f32.partialorder %v41_v12, 0  ;;  %vm98_vm1 = vcmp.lt.s32.totalorder %v41_v12, 0 }
  0xa2   :  { %vm108_vm13 = vmand %vm83_vm5, %vm96_vm9  ;;  %vm120_vm7 = vcmp.ne.f32.partialorder %v41_v12, %v41_v12  ;;  %v118_v38 = vsel %vm95_vm12, %v117_v33, %v115_v24 }
  0xa3   :  { %292 = vlog2.f32 %v75_v13  ;;  %vm99_vm6 = vcmp.gt.f32.partialorder %v75_v13, 1065353216  ;;  %vm101_vm15 = vmand %vm95_vm12, %vm372_vm2  ;;  %vm100_vm2 = vcmp.eq.f32.partialorder %v75_v13, 2139095040 }
  0xa4   :  { %vm109_vm10 = vmxor %vm83_vm5, %vm99_vm6  ;;  %vm112_vm6 = vcmp.eq.f32.partialorder %v41_v12, 3212836864 }
  0xa5   :  { %vm110_vm14 = vmor %vm108_vm13, %vm109_vm10  ;;  %vm97_vm10 = vcmp.eq.f32.partialorder %v41_v12, 1065353216  ;;  %vm47_vm13 = vcmask 7168  }
  0xa6   :  { %v111_v32 = vsel %vm110_vm14, 2139095040, %v334_v28  ;;  %vm105_vm4 = vmand %vm98_vm1, %vm380_vm11  ;;  %vm82_vm14 = vcmp.eq.f32.partialorder %v45_v14, 1065353216 }
  0xa7   :  { %v113_v36 = vsel %vm112_vm6, 1065353216, %v111_v32  ;;  %vm122_vm5 = vmor %vm120_vm7, %vm121_vm3 }
  0xb0   :  { %v293_v19 = vpop.eup %292 }
  0xb1   :  { %v77_v20 = vmul.f32 %v293_v19, %v45_v14 }
  0xb3   :  { %294 = vpow2.f32 %v77_v20 }
  0xc0   :  { %v295_v27 = vpop.eup %294 }
  0xc1   :  { %v102_v30 = vsel %vm101_vm15, 2143289344, %v295_v27 }
  0xc2   :  { %v104_v31 = vsel %vm96_vm9, %v103_v29, %v102_v30  ;;  %vm124_vm9 = vmor %vm97_vm10, %vm81_vm8 }
  0xc3   :  { %v106_v34 = vxor.u32 2147483648, %v104_v31 }
  0xc5   :  { %v107_v35 = vsel %vm105_vm4, %v106_v34, %v104_v31 }
  0xc6   :  { %v114_v37 = vsel %vm80_vm0, %v113_v36, %v107_v35 }
  0xc7   :  { %v119_v39 = vsel %vm100_vm2, %v118_v38, %v114_v37 }
  0xc8   :  { %v123_v40 = vsel %vm122_vm5, 2143289344, %v119_v39 }
  0xc9   :  { %v125_v41 = vsel %vm124_vm9, 1065353216, %v123_v40 }
  0xca   :  { %v126_v42 = vsel %vm82_vm14, %v41_v12, %v125_v41 }
  0xcb   :  { %48 = vst.msk [vmem:[%s582_s2] sm:$0xff] %vm47_vm13, %v126_v42 }
  0xcc PF:  { %p49_p6 = scmp.ne.f32.partialorder %s580_s0, 3.0 }
  0xcd   :  { %v402_v43 = vand.u32 (%p49_p6), 2147483647, %v358_v2  ;;  %v408_v44 = vstv (%p49_p6), %s580_s0  ;;  %v411_v45 = vand.u32 (%p49_p6), 2147483647, %v360_v3  ;;  %vm148_vm1 = vcmp.eq.f32.partialorder (%p49_p6), %v358_v2, 0 }
  0xce   :  { %52 = sbr.rel (!%p49_p6) target bundleno = 433 (0x1b1), region = 21  ;;  %v414_v46 = vand.u32 (%p49_p6), 2147483647, %v408_v44  ;;  %v136_v48 = vtrunc.f32 (%p49_p6), %v408_v44  ;;  %vm135_vm15 = vcmp.lt.f32.partialorder (%p49_p6), %v408_v44, 0  ;;  %vm147_vm7 = vcmp.lt.f32.partialorder (%p49_p6), %v358_v2, 0 }
  0xcf   :  { %296 = vlog2.f32 (%p49_p6), %v402_v43  ;;  %vm151_vm3 = vcmp.gt.f32.partialorder (%p49_p6), %v402_v43, 1065353216  ;;  %vm440_vm8 = vmand (%p49_p6), %vm135_vm15, %vm148_vm1  ;;  %v335_v59 = vmov (%p49_p6), 2139095040   ;;  %vm583_vm13 = vcmp.eq.f32.partialorder (%p49_p6), %v360_v3, 0 }
  0xd0   :  { %298 = vlog2.f32 (%p49_p6), %v411_v45  ;;  %v140_v47 = vtrunc.f32 (%p49_p6), %v414_v46  ;;  %vm132_vm0 = vcmp.eq.f32.partialorder (%p49_p6), %v414_v46, 2139095040  ;;  %vm137_vm11 = vcmp.ne.f32.partialorder (%p49_p6), %v408_v44, %v136_v48  ;;  %vm446_vm10 = vmxor (%p49_p6), %vm135_vm15, %vm151_vm3 }
  0xd1   :  { %300 = vrcp.f32 (%p49_p6), %v408_v44  ;;  %vm425_vm12 = vmor (%p49_p6), %vm137_vm11, %vm132_vm0  ;;  %v167_v60 = vsel (%p49_p6), %vm135_vm15, 0, %v335_v59  ;;  %vm139_vm2 = vcmp.lt.f32.partialorder (%p49_p6), %v414_v46, 1266679808  ;;  %vm203_vm11 = vcmp.gt.f32.partialorder (%p49_p6), %v411_v45, 1065353216 }
  0xd2   :  { %v141_v50 = vcvt.f32.s32 (%p49_p6), %v140_v47  ;;  %vm144_vm6 = vmneg (%p49_p6), %vm425_vm12  ;;  %v168_v62 = vxor.u32 (%p49_p6), 2147483648, %v167_v60  ;;  %v336_v0 = vmov (%p49_p6), 0  }
  0xd3   :  { %vm458_vm9 = vmand %vm147_vm7, %vm425_vm12  ;;  %v155_v1 = vsel %vm135_vm15, 2139095040, %v336_v0 }
  0xd4   :  { %v142_v52 = vand.u32 1, %v141_v50  ;;  %vm162_vm14 = vmor %vm440_vm8, %vm446_vm10  ;;  %vm164_vm8 = vcmp.eq.f32.partialorder %v358_v2, 3212836864 }
  0xd5   :  { %v163_v6 = vsel %vm162_vm14, 2139095040, %v336_v0  ;;  %vm488_vm10 = vmxor %vm135_vm15, %vm203_vm11  ;;  %vm173_vm14 = vcmp.ne.f32.partialorder %v408_v44, %v408_v44  ;;  %vm133_vm11 = vcmp.eq.f32.partialorder %v408_v44, 0 }
  0xd6   :  { %vm143_vm4 = vcmp.eq.s32.totalorder %v142_v52, 1  ;;  %v165_v12 = vsel %vm164_vm8, 1065353216, %v163_v6 }
  0xd7   :  { %vm145_vm5 = vmand %vm143_vm4, %vm144_vm6  ;;  %vm150_vm4 = vcmp.lt.s32.totalorder %v358_v2, 0 }
  0xd8   :  { %vm468_vm3 = vmand %vm139_vm2, %vm145_vm5  ;;  %vm199_vm2 = vcmp.lt.f32.partialorder %v360_v3, 0 }
  0xd9   :  { %vm480_vm6 = vmand %vm135_vm15, %vm583_vm13  ;;  %v169_v9 = vsel %vm468_vm3, %v168_v62, %v167_v60  ;;  %vm172_vm15 = vcmp.ne.f32.partialorder %v358_v2, %v358_v2  ;;  %vm152_vm13 = vcmp.eq.f32.partialorder %v402_v43, 2139095040 }
  0xda   :  { %vm157_vm5 = vmand %vm150_vm4, %vm468_vm3  ;;  %v170_v13 = vsel %vm147_vm7, %v169_v9, %v167_v60  ;;  %vm216_vm7 = vcmp.eq.f32.partialorder %v360_v3, 3212836864  ;;  %v222_v25 = vsel %vm199_vm2, %v169_v9, %v167_v60 }
  0xdb   :  { %vm205_vm4 = vmand %vm199_vm2, %vm425_vm12 }
  0xdc   :  { %v297_v49 = vpop.eup %296  ;;  %vm521_vm8 = vmor %vm172_vm15, %vm173_vm14  ;;  %vm224_vm15 = vcmp.ne.f32.partialorder %v360_v3, %v360_v3 }
  0xdd   :  { %v129_v51 = vmul.f32 %v297_v49, %v408_v44  ;;  %v299_v54 = vpop.eup %298 }
  0xde   :  { %v181_v55 = vmul.f32 %v299_v54, %v408_v44  ;;  %v301_v56 = vpop.eup %300 }
  0xdf   :  { %302 = vpow2.f32 %v129_v51  ;;  %231 = vpush %v301_v56 }
  0xe0   :  { %304 = vpow2.f32 %v181_v55 }
  0xec   :  { %v303_v5 = vpop.eup %302 }
  0xed   :  { %v154_v8 = vsel %vm458_vm9, 2143289344, %v303_v5  ;;  %vm214_vm9 = vmor %vm480_vm6, %vm488_vm10  ;;  %vm202_vm6 = vcmp.lt.s32.totalorder %v360_v3, 0  ;;  %v305_v16 = vpop.eup %304  ;;  %vm604_vm10 = vcmp.eq.f32.partialorder %v360_v3, 0 }
  0xee   :  { %v156_v10 = vsel %vm148_vm1, %v155_v1, %v154_v8  ;;  %vm149_vm1 = vcmp.eq.f32.partialorder %v358_v2, 1065353216  ;;  %v215_v18 = vsel %vm214_vm9, 2139095040, %v336_v0  ;;  %v206_v20 = vsel %vm205_vm4, 2143289344, %v305_v16 }
  0xef   :  { %v158_v11 = vxor.u32 2147483648, %v156_v10  ;;  %vm176_vm12 = vmor %vm149_vm1, %vm133_vm11  ;;  %v208_v22 = vsel %vm604_vm10, %v155_v1, %v206_v20  ;;  %vm201_vm9 = vcmp.eq.f32.partialorder %v360_v3, 1065353216  ;;  %v217_v24 = vsel %vm216_vm7, 1065353216, %v215_v18 }
  0xf0   :  { %v210_v23 = vxor.u32 2147483648, %v208_v22  ;;  %vm134_vm1 = vcmp.eq.f32.partialorder %v408_v44, 1065353216  ;;  %vm228_vm4 = vmor %vm201_vm9, %vm133_vm11 }
  0xf1   :  { %v159_v14 = vsel %vm157_vm5, %v158_v11, %v156_v10  ;;  %vm209_vm5 = vmand %vm202_vm6, %vm468_vm3 }
  0xf2   :  { %v166_v17 = vsel %vm132_vm0, %v165_v12, %v159_v14  ;;  %v211_v27 = vsel %vm209_vm5, %v210_v23, %v208_v22  ;;  %vm226_vm3 = vmor %vm224_vm15, %vm173_vm14 }
  0xf3   :  { %v171_v19 = vsel %vm152_vm13, %v170_v13, %v166_v17  ;;  %vm204_vm13 = vcmp.eq.f32.partialorder %v411_v45, 2139095040  ;;  %v218_v28 = vsel %vm132_vm0, %v217_v24, %v211_v27 }
  0xf4   :  { %v175_v21 = vsel %vm521_vm8, 2143289344, %v171_v19  ;;  %v223_v29 = vsel %vm204_vm13, %v222_v25, %v218_v28 }
  0xf5   :  { %v177_v26 = vsel %vm176_vm12, 1065353216, %v175_v21  ;;  %v227_v31 = vsel %vm226_vm3, 2143289344, %v223_v29 }
  0xf6   :  { %v178_v30 = vsel %vm134_vm1, %v358_v2, %v177_v26  ;;  %v229_v32 = vsel %vm228_vm4, 1065353216, %v227_v31 }
  0xf7   :  { %v230_v33 = vsel %vm134_vm1, %v360_v3, %v229_v32 }
  0xf8   :  { %v56_v34 = vadd.f32 %v230_v33, %v178_v30 }
  0xfa   :  { %57 = vadd.xlane.f32.xlu0 %v56_v34 }
 0x110   :  { %s232_s0 = spop %231 }
 0x111   :  { %v64_v38 = vstv %s232_s0 }
 0x112   :  { %v237_v39 = vand.u32 2147483647, %v64_v38  ;;  %v242_v41 = vtrunc.f32 %v64_v38  ;;  %vm241_vm6 = vcmp.lt.f32.partialorder %v64_v38, 0 }
 0x113   :  { %v273_v45 = vsel %vm241_vm6, 0, %v335_v59  ;;  %v261_v49 = vsel %vm241_vm6, 2139095040, %v336_v0 }
 0x114   :  { %v246_v40 = vtrunc.f32 %v237_v39  ;;  %vm238_vm0 = vcmp.eq.f32.partialorder %v237_v39, 2139095040  ;;  %vm243_vm2 = vcmp.ne.f32.partialorder %v64_v38, %v242_v41  ;;  %vm245_vm12 = vcmp.lt.f32.partialorder %v237_v39, 1266679808 }
 0x115   :  { %vm555_vm14 = vmor %vm243_vm2, %vm238_vm0  ;;  %v274_v47 = vxor.u32 2147483648, %v273_v45 }
 0x116   :  { %v247_v42 = vcvt.f32.s32 %v246_v40  ;;  %vm250_vm8 = vmneg %vm555_vm14 }
 0x118   :  { %v248_v44 = vand.u32 1, %v247_v42 }
 0x11a   :  { %vm249_vm11 = vcmp.eq.s32.totalorder %v248_v44, 1 }
 0x11b   :  { %vm251_vm10 = vmand %vm249_vm11, %vm250_vm8  ;;  %vm279_vm11 = vcmp.ne.f32.partialorder %v64_v38, %v64_v38 }
 0x11c   :  { %vm562_vm9 = vmand %vm245_vm12, %vm251_vm10  ;;  %vm239_vm10 = vcmp.eq.f32.partialorder %v64_v38, 0 }
 0x11d   :  { %v275_v53 = vsel %vm562_vm9, %v274_v47, %v273_v45 }
 0x183   :  { %v58_v35 = vpop.xlane.xlu0 %57 }
 0x184   :  { %v60_v36 = vmul.f32 0.00390625, %v58_v35 }
 0x186   :  { %v233_v37 = vand.u32 2147483647, %v60_v36  ;;  %vm254_vm5 = vcmp.eq.f32.partialorder %v60_v36, 0  ;;  %vm253_vm13 = vcmp.lt.f32.partialorder %v60_v36, 0  ;;  %vm256_vm2 = vcmp.lt.s32.totalorder %v60_v36, 0 }
 0x187   :  { %vm266_vm1 = vmand %vm241_vm6, %vm254_vm5  ;;  %vm278_vm12 = vcmp.ne.f32.partialorder %v60_v36, %v60_v36  ;;  %v276_v58 = vsel %vm253_vm13, %v275_v53, %v273_v45 }
 0x188   :  { %306 = vlog2.f32 %v233_v37  ;;  %vm257_vm7 = vcmp.gt.f32.partialorder %v233_v37, 1065353216  ;;  %vm259_vm4 = vmand %vm253_vm13, %vm555_vm14  ;;  %vm258_vm14 = vcmp.eq.f32.partialorder %v233_v37, 2139095040 }
 0x189   :  { %vm267_vm15 = vmxor %vm241_vm6, %vm257_vm7  ;;  %vm270_vm7 = vcmp.eq.f32.partialorder %v60_v36, 3212836864 }
 0x18a   :  { %vm268_vm3 = vmor %vm266_vm1, %vm267_vm15  ;;  %vm255_vm15 = vcmp.eq.f32.partialorder %v60_v36, 1065353216  ;;  %vm66_vm1 = vcmask 7168  }
 0x18b   :  { %v269_v52 = vsel %vm268_vm3, 2139095040, %v336_v0  ;;  %vm263_vm8 = vmand %vm256_vm2, %vm562_vm9  ;;  %vm240_vm3 = vcmp.eq.f32.partialorder %v64_v38, 1065353216 }
 0x18c   :  { %v271_v56 = vsel %vm270_vm7, 1065353216, %v269_v52  ;;  %vm280_vm6 = vmor %vm278_vm12, %vm279_vm11 }
 0x195   :  { %v307_v43 = vpop.eup %306 }
 0x196   :  { %v235_v2 = vmul.f32 %v307_v43, %v64_v38 }
 0x198   :  { %308 = vpow2.f32 %v235_v2 }
 0x1a5   :  { %v309_v48 = vpop.eup %308 }
 0x1a6   :  { %v260_v50 = vsel %vm259_vm4, 2143289344, %v309_v48 }
 0x1a7   :  { %v262_v51 = vsel %vm254_vm5, %v261_v49, %v260_v50  ;;  %vm282_vm5 = vmor %vm255_vm15, %vm239_vm10 }
 0x1a8   :  { %v264_v54 = vxor.u32 2147483648, %v262_v51 }
 0x1aa   :  { %v265_v55 = vsel %vm263_vm8, %v264_v54, %v262_v51 }
 0x1ab   :  { %v272_v57 = vsel %vm238_vm0, %v271_v56, %v265_v55 }
 0x1ac   :  { %v277_v59 = vsel %vm258_vm14, %v276_v58, %v272_v57 }
 0x1ad   :  { %v281_v60 = vsel %vm280_vm6, 2143289344, %v277_v59 }
 0x1ae   :  { %v283_v61 = vsel %vm282_vm5, 1065353216, %v281_v60 }
 0x1af   :  { %v284_v62 = vsel %vm240_vm3, %v60_v36, %v283_v61 }
 0x1b0   :  { %67 = vst.msk [vmem:[%s582_s2] sm:$0xff] %vm66_vm1, %v284_v62 }
 0x1b1 PF:  { %72 = vsyncpa [#allocation4], 1 }

</bundles_post_ra>
